<compile_context>
chip_gen: v5e
topology: v5e:2x2
jax: 0.10.0
libtpu: 0.0.40
codegen_flags: <defaults>
</compile_context>

<pallas_src>
import jax
import jax.numpy as jnp
from jax.experimental import pallas as pl
from jax.experimental.pallas import tpu as pltpu


def _round_up(x: int, m: int) -> int:
    return ((x + m - 1) // m) * m


def _sublane(dtype) -> int:
    # f32 -> 8, bf16/f16 -> 16, int8/fp8 -> 32 (sub-32-bit dtypes pack along sublanes).
    return max(8, 32 // jnp.dtype(dtype).itemsize)


def _checkin_kernel(hot_ref, reg_ref, usr_ref, out_ref):
    # hot_ref: (TN, H)  reg_ref: (TN, R)  usr_ref: (1, U)  out_ref: (TN, D_pad)
    tn = out_ref.shape[0]
    h = hot_ref.shape[1]
    r = reg_ref.shape[1]
    u = usr_ref.shape[1]
    d = h + r + u
    d_pad = out_ref.shape[1]

    hot = hot_ref[...]
    reg = reg_ref[...]
    # LeakyReLU(0.2) on the POI part only (hotness ++ region), matching PyTorch.
    poi_hot = jnp.where(hot >= 0, hot, 0.2 * hot)
    poi_reg = jnp.where(reg >= 0, reg, 0.2 * reg)
    # Broadcast of the user row folded into the single concatenated store value.
    usr = jnp.broadcast_to(usr_ref[...], (tn, u))

    pieces = [poi_hot, poi_reg, usr]
    if d_pad > d:  # static (trace-time) branch: lane padding to a 128 multiple
        pieces.append(jnp.zeros((tn, d_pad - d), dtype=out_ref.dtype))

    # One full-width, lane-dense store per tile (no masked partial-column vst).
    out_ref[...] = jnp.concatenate(pieces, axis=-1)


def checkin_embedding_ref(user_embedding, region_embeddings, hotness_embeddings):
    """Pure-JAX reference matching the PyTorch loop (vectorized)."""
    n = region_embeddings.shape[0]
    poi = jnp.concatenate([hotness_embeddings, region_embeddings], axis=1)
    poi = jnp.where(poi >= 0, poi, 0.2 * poi)
    usr = jnp.broadcast_to(user_embedding[None, :], (n, user_embedding.shape[0]))
    return jnp.concatenate([poi, usr], axis=1)


def checkin_embedding(user_embedding, region_embeddings, hotness_embeddings,
                      *, tile_rows=None, force_pallas=False):
    """user_embedding: (U,), region_embeddings: (N, R), hotness_embeddings: (N, H)
    returns (N, H + R + U), row i = [leaky_relu([hot_i, reg_i]), user]."""
    n, r_dim = region_embeddings.shape
    h_dim = hotness_embeddings.shape[1]
    u_dim = user_embedding.shape[0]
    d = h_dim + r_dim + u_dim

    # Unify dtypes so no implicit cast happens on store.
    dtype = jnp.result_type(user_embedding.dtype,
                            region_embeddings.dtype,
                            hotness_embeddings.dtype)
    user_embedding = user_embedding.astype(dtype)
    region_embeddings = region_embeddings.astype(dtype)
    hotness_embeddings = hotness_embeddings.astype(dtype)

    if n == 0:
        return jnp.zeros((0, d), dtype=dtype)

    itemsize = jnp.dtype(dtype).itemsize
    d_pad = _round_up(d, 128)  # lane-dense output stores

    # Small-N fast path: pallas_call launch + grid-step overhead dominates there.
    if (not force_pallas) and n * d_pad * itemsize < (256 << 10):
        return checkin_embedding_ref(user_embedding, region_embeddings,
                                     hotness_embeddings)

    # Row tile: dtype-aware sublane multiple, capped at 4096 rows.
    # Corrected VMEM accounting (inputs are lane-PADDED to 128 in VMEM):
    #   double-buffered ~= 2 * TN * (pad128(H) + pad128(R) + D_pad) * itemsize
    #   ~= 12.6 MiB at TN=4096 for the demo dims -> fits v5e/v6e scoped VMEM
    #   and v7x's 64 MiB physical VMEM per TensorCore.
    sub = _sublane(dtype)
    if tile_rows is None:
        tn = min(4096, _round_up(n, sub))
    else:
        tn = min(_round_up(tile_rows, sub), _round_up(n, sub))

    grid = (pl.cdiv(n, tn),)   # ragged N: boundary block handled by Pallas, no jnp.pad

    vmem_need = 2 * tn * (_round_up(h_dim, 128) + _round_up(r_dim, 128) + d_pad) * itemsize
    vmem_limit = min(56 << 20, max(16 << 20, int(vmem_need * 1.25) + (1 << 20)))

    usr2d = user_embedding.reshape(1, u_dim)

    out = pl.pallas_call(
        _checkin_kernel,
        out_shape=jax.ShapeDtypeStruct((n, d_pad), dtype),
        grid=grid,
        in_specs=[
            pl.BlockSpec((tn, h_dim), lambda i: (i, 0)),
            pl.BlockSpec((tn, r_dim), lambda i: (i, 0)),
            pl.BlockSpec((1, u_dim), lambda i: (0, 0)),
        ],
        out_specs=pl.BlockSpec((tn, d_pad), lambda i: (i, 0)),
        compiler_params=pltpu.CompilerParams(
            dimension_semantics=("parallel",),
            vmem_limit_bytes=vmem_limit,
        ),
    )(hotness_embeddings, region_embeddings, usr2d)

    return out if d_pad == d else out[:, :d]


if __name__ == "__main__":
    # Small synthetic shapes consistent with the module:
    #   num check-ins N = 8, hotness dim = 16, region dim = 48, user dim = 64
    #   => checkin_embed_dim = 128
    N, H, R, U = 8, 16, 48, 64
    key = jax.random.PRNGKey(0)
    k_hot, k_reg, k_usr = jax.random.split(key, 3)

    hotness = jax.random.normal(k_hot, (N, H), dtype=jnp.float32)
    region = jax.random.normal(k_reg, (N, R), dtype=jnp.float32)
    user = jax.random.normal(k_usr, (U,), dtype=jnp.float32)

    # Force the Pallas path even at tiny N so the kernel itself is validated.
    out = jax.block_until_ready(checkin_embedding(user, region, hotness,
                                                  force_pallas=True))
    ref = checkin_embedding_ref(user, region, hotness)
    assert out.shape == (N, H + R + U), out.shape
    assert jnp.allclose(out, ref, atol=1e-6, rtol=1e-6), "mismatch vs reference"

    # Ragged, multi-tile case (forced small tile to exercise the boundary block
    # handling without any wrapper-side padding).
    N2 = 200
    hot2 = jax.random.normal(jax.random.PRNGKey(1), (N2, H), dtype=jnp.float32)
    reg2 = jax.random.normal(jax.random.PRNGKey(2), (N2, R), dtype=jnp.float32)
    out2 = jax.block_until_ready(checkin_embedding(user, reg2, hot2,
                                                   tile_rows=64, force_pallas=True))
    ref2 = checkin_embedding_ref(user, reg2, hot2)
    assert out2.shape == (N2, H + R + U), out2.shape
    assert jnp.allclose(out2, ref2, atol=1e-6, rtol=1e-6), "mismatch vs reference (ragged)"

    # Default path (small-N XLA fast path) sanity check.
    out3 = jax.block_until_ready(checkin_embedding(user, region, hotness))
    assert jnp.allclose(out3, ref, atol=1e-6, rtol=1e-6), "mismatch (fast path)"

    print("KERNEL_OK")
</pallas_src>

<mosaic_0001>
module attributes {stable_mosaic.version = 11 : i64} {
  func.func @_checkin_kernel(%arg0: i32, %arg1: memref<8x16xf32, #tpu.memory_space<vmem>>, %arg2: memref<8x48xf32, #tpu.memory_space<vmem>>, %arg3: memref<1x64xf32, #tpu.memory_space<vmem>>, %arg4: memref<8x128xf32, #tpu.memory_space<vmem>>) attributes {dimension_semantics = [#tpu.dimension_semantics<parallel>], iteration_bounds = array<i64: 1>, scalar_prefetch = 0 : i64, scratch_operands = 0 : i64, tpu.core_type = #tpu.core_type<tc>, window_params = [{transform_indices = @transform_0, window_bounds = array<i64: 8, 16>}, {transform_indices = @transform_1, window_bounds = array<i64: 8, 48>}, {pipeline_mode = #tpu.pipeline_mode<synchronous>, transform_indices = @transform_2, window_bounds = array<i64: 1, 64>}, {transform_indices = @transform_3, window_bounds = array<i64: 8, 128>}]} {
    %c0 = arith.constant 0 : index
    %c0_0 = arith.constant 0 : index
    %0 = vector.load %arg1[%c0, %c0_0] : memref<8x16xf32, #tpu.memory_space<vmem>>, vector<8x16xf32>
    %c0_1 = arith.constant 0 : index
    %c0_2 = arith.constant 0 : index
    %1 = vector.load %arg2[%c0_1, %c0_2] : memref<8x48xf32, #tpu.memory_space<vmem>>, vector<8x48xf32>
    %cst = arith.constant 0.000000e+00 : f32
    %2 = vector.broadcast %cst : f32 to vector<8x16xf32>
    %3 = arith.cmpf oge, %0, %2 : vector<8x16xf32>
    %cst_3 = arith.constant 2.000000e-01 : f32
    %4 = vector.broadcast %cst_3 : f32 to vector<8x16xf32>
    %5 = arith.mulf %4, %0 : vector<8x16xf32>
    %6 = arith.select %3, %0, %5 : vector<8x16xi1>, vector<8x16xf32>
    %cst_4 = arith.constant 0.000000e+00 : f32
    %7 = vector.broadcast %cst_4 : f32 to vector<8x48xf32>
    %8 = arith.cmpf oge, %1, %7 : vector<8x48xf32>
    %cst_5 = arith.constant 2.000000e-01 : f32
    %9 = vector.broadcast %cst_5 : f32 to vector<8x48xf32>
    %10 = arith.mulf %9, %1 : vector<8x48xf32>
    %11 = arith.select %8, %1, %10 : vector<8x48xi1>, vector<8x48xf32>
    %c0_6 = arith.constant 0 : index
    %c0_7 = arith.constant 0 : index
    %12 = vector.load %arg3[%c0_6, %c0_7] : memref<1x64xf32, #tpu.memory_space<vmem>>, vector<1x64xf32>
    %13 = vector.shape_cast %12 : vector<1x64xf32> to vector<1x64xf32>
    %14 = vector.broadcast %13 : vector<1x64xf32> to vector<8x64xf32>
    %15 = tpu.concatenate %6, %11, %14 in 1 : vector<8x16xf32>, vector<8x48xf32>, vector<8x64xf32> -> vector<8x128xf32>
    %c0_8 = arith.constant 0 : index
    %c0_9 = arith.constant 0 : index
    %16 = vector.load %arg4[%c0_8, %c0_9] : memref<8x128xf32, #tpu.memory_space<vmem>>, vector<8x128xf32>
    tpu.vector_store %arg4[%c0_8, %c0_9], %15 {strides = array<i32>} : memref<8x128xf32, #tpu.memory_space<vmem>>, vector<8x128xf32>,
    return
  }
  func.func @transform_0(%arg0: i32) -> (i32, i32) {
    %c0_i32 = arith.constant 0 : i32
    %c0_i32_0 = arith.constant 0 : i32
    return %arg0, %c0_i32 : i32, i32
  }
  func.func @transform_1(%arg0: i32) -> (i32, i32) {
    %c0_i32 = arith.constant 0 : i32
    %c0_i32_0 = arith.constant 0 : i32
    return %arg0, %c0_i32 : i32, i32
  }
  func.func @transform_2(%arg0: i32) -> (i32, i32) {
    %c0_i32 = arith.constant 0 : i32
    %c0_i32_0 = arith.constant 0 : i32
    %c0_i32_1 = arith.constant 0 : i32
    return %c0_i32, %c0_i32_0 : i32, i32
  }
  func.func @transform_3(%arg0: i32) -> (i32, i32) {
    %c0_i32 = arith.constant 0 : i32
    %c0_i32_0 = arith.constant 0 : i32
    return %arg0, %c0_i32 : i32, i32
  }
}

</mosaic_0001>

<bundles_post_ra>
// kernel: tpu_custom_call.1
= control target key start
LH: loop header
LB: loop body
LE: loop exit
PB: predicated region body
PF: predicated region fallthrough
CT: control target
= control target key end

     0   :  { %8 = vsyncpa [#allocation3], 0  ;;  %s205_s0 = inlined_call_operand.hbm [shape: f32[8,16], index: 0, kind: input, shape index: {}]   ;;  %s206_s1 = inlined_call_operand.hbm [shape: f32[8,48], index: 1, kind: input, shape index: {}]   ;;  %s207_s2 = inlined_call_operand.vmem [shape: f32[1,64], index: 2, kind: input, shape index: {}]   ;;  %s208_s3 = inlined_call_operand.hbm [shape: f32[8,128], index: 3, kind: output, shape index: {}]  }
   0x1   :  { %9 = vsyncpa [#allocation6], 0 }
   0x2   :  { %10 = vsyncpa [#allocation4], 0  ;;  %s16_s14 = sshll.u32 %s205_s0, 4  ;;  %s168_s15 = smov [#allocation2]   ;;  %s17_s14 = int_to_ptr.hbm [resolvable:$true] %s16_s14 }
   0x3   :  { %s18_s16 = sshll.u32 %s168_s15, 4  ;;  %s27_s19 = sshll.u32 %s206_s1, 4  ;;  %s19_s16 = int_to_ptr.vmem [resolvable:$true] %s18_s16  ;;  %s28_s19 = int_to_ptr.hbm [resolvable:$true] %s27_s19 }
   0x4   :  { %21 = dma.hbm_to_vmem [thread:$0]  %s17_s14, 128, %s19_s16, [#allocation3]  }
   0x5   :  { %s169_s20 = smov [#allocation5]  }
   0x6   :  { %s29_s21 = sshll.u32 %s169_s20, 4  ;;  %s30_s21 = int_to_ptr.vmem [resolvable:$true] %s29_s21 }
   0x7   :  { %32 = dma.hbm_to_vmem [thread:$0]  %s28_s19, 128, %s30_s21, [#allocation6]  }
   0x8   :  { %162 = dma.done.wait [#allocation3], 128  }
   0x9   :  { %163 = vsyncadd [#allocation3], 4294967168 }
   0xa   :  { %164 = dma.done.wait [#allocation6], 128  }
   0xb   :  { %165 = vsyncadd [#allocation6], 4294967168  ;;  %v44_v0 = vld [vmem:[#allocation5] sm:$0xff]  ;;  %s170_s0 = smov 16   ;;  %v89_v3 = vld [vmem:[%s207_s2] ss:$0 sm:$0xff] }
   0xc   :  { %vm48_vm0 = vcmp.ge.f32.partialorder %v44_v0, 0.0  ;;  %v49_v1 = vmul.f32 0.2, %v44_v0  ;;  %s171_s1 = smov 64   ;;  %v43_v4 = vld [vmem:[#allocation2] sm:$0xff]  ;;  %vm61_vm2 = vcmask 130048  }
   0xd   :  { %v46_v6 = vmul.f32 0.2, %v43_v4  ;;  %vm45_vm1 = vcmp.ge.f32.partialorder %v43_v4, 0.0  ;;  %s172_s24 = smov [#allocation7]   ;;  %s73_s28 = sshll.u32 %s208_s3, 4  ;;  %vm63_vm3 = vcmask 523264   ;;  %s74_s28 = int_to_ptr.hbm [resolvable:$true] %s73_s28 }
   0xe   :  { %v50_v2 = vsel %vm48_vm0, %v44_v0, %v49_v1  ;;  %s71_s25 = sshll.u32 %s172_s24, 4  ;;  %s72_s25 = int_to_ptr.vmem [resolvable:$true] %s71_s25 }
   0xf   :  { %55 = vrot.lane.b32.xlu0 %v50_v2, %s170_s0  ;;  %v47_v7 = vsel %vm45_vm1, %v43_v4, %v46_v6 }
  0x17   :  { %58 = vrot.lane.b32.xlu0 %v89_v3, %s171_s1 }
  0x81   :  { %v56_v5 = vpop.permute.xlu0 %55 }
  0x82   :  { %v62_v8 = vsel %vm61_vm2, %v47_v7, %v56_v5 }
  0x89   :  { %v59_v9 = vpop.permute.xlu0 %58 }
  0x8a   :  { %v64_v10 = vsel %vm63_vm3, %v62_v8, %v59_v9 }
  0x8b   :  { %65 = vst [vmem:[#allocation7] sm:$0xff] %v64_v10 }
  0x8c   :  { %76 = dma.vmem_to_hbm [thread:$0]  %s72_s25, 128, %s74_s28, [#allocation4]  }
  0x8d   :  { %166 = dma.done.wait [#allocation4], 128  }
  0x8e   :  { %167 = vsyncadd [#allocation4], 4294967168 }
  0x8f   :  { %81 = vsyncpa [#allocation3], 1 }
  0x90   :  { %82 = vsyncpa [#allocation6], 1 }
  0x91   :  { %83 = vsyncpa [#allocation4], 1 }

</bundles_post_ra>
